<compile_context>
chip_gen: v7x
topology: tpu7x:2x2x1
jax: 0.10.0
libtpu: 0.0.40
codegen_flags: <defaults>
</compile_context>

<pallas_src>
from functools import partial

import jax
import jax.numpy as jnp
from jax.experimental import pallas as pl
from jax.experimental.pallas import tpu as pltpu


# ----------------------------------------------------------------------------
# Minimal PackedTensor stand-in (only the attribute DDP.forward touches).
# ----------------------------------------------------------------------------
class PackedTensor:
    def __init__(self, tensor):
        self.tensor = tensor


def _round_up(x, m):
    return (x + m - 1) // m * m


def _cdiv(a, b):
    return -(-a // b)


def _choose_batch_tiling(B):
    """Pick (tile_b, n_tiles) with Bp = tile_b * n_tiles and < 8*n_tiles waste.

    ~1024-row tiles sit past the measured HBM-roofline knee (512-1024 rows);
    when B is large enough we force >= 2 grid steps so the "parallel" batch
    axis can be sharded across v7x's two TensorCores (neutral on v5e/v6e).
    """
    TARGET = 1024
    n_tiles = max(1, _cdiv(B, TARGET))
    if n_tiles == 1 and B >= 1024:
        n_tiles = 2
    tile_b = _round_up(_cdiv(B, n_tiles), 8)
    return tile_b, n_tiles


# ----------------------------------------------------------------------------
# Pallas kernel: fused two-layer MLP forward (the wrapped `net`).
# x/w1/w2 arrive as bf16, biases f32; both dots accumulate in f32 on the MXU;
# writeback is bf16 (lane-dense Op block -> unmasked vst).
# ----------------------------------------------------------------------------
def _mlp_kernel(x_ref, w1_ref, b1_ref, w2_ref, b2_ref, o_ref):
    h = jnp.dot(x_ref[...], w1_ref[...],
                preferred_element_type=jnp.float32)      # [TB, Hp] f32 acc
    h = jnp.maximum(h + b1_ref[...], 0.0)                # bias + ReLU in f32 (VPU)
    y = jnp.dot(h.astype(jnp.bfloat16), w2_ref[...],
                preferred_element_type=jnp.float32)      # [TB, Op] f32 acc
    o_ref[...] = (y + b2_ref[...]).astype(o_ref.dtype)   # bf16 writeback


# ----------------------------------------------------------------------------
# Jitted wrapper: batch-pad/cast x, batch-tiled pallas_call, slice + upcast.
# Weights/biases come in already padded + cast (done once in the net ctor).
# ----------------------------------------------------------------------------
@partial(jax.jit, static_argnames=("out_dim",))
def mlp_forward(x, w1p, b1p, w2p, b2p, *, out_dim):
    B, D = x.shape
    Hp = w1p.shape[1]
    Op = w2p.shape[1]

    tile_b, n_tiles = _choose_batch_tiling(B)
    Bp = tile_b * n_tiles

    # Only the batch axis is padded (bounded to < 8 * n_tiles zero rows); the
    # input feature dim keeps its true size (full-extent last dim on x).
    xp = jnp.pad(x, ((0, Bp - B), (0, 0))).astype(jnp.bfloat16)

    # VMEM footprint: double-buffered x/out tiles, (double-buffered) resident
    # weights/biases, plus the f32 hidden intermediate.  Raise the scoped limit
    # only as far as needed (v5e default 16 MiB; keep under v7x's 64 MiB).
    vmem_bytes = (2 * tile_b * D * 2            # x tiles, bf16, double-buffered
                  + 2 * tile_b * Op * 2         # out tiles, bf16, double-buffered
                  + 2 * (D * Hp + Hp * Op) * 2  # weights, bf16 (2 buffers each)
                  + 2 * (Hp + Op) * 4 * 2       # biases, f32
                  + tile_b * Hp * 4)            # f32 hidden intermediate
    vmem_limit = min(48 * 1024 * 1024,
                     max(16 * 1024 * 1024, int(vmem_bytes * 1.5)))

    out = pl.pallas_call(
        _mlp_kernel,
        out_shape=jax.ShapeDtypeStruct((Bp, Op), jnp.bfloat16),
        grid=(n_tiles,),
        in_specs=[
            # activations: streamed (double-buffered) over the batch grid axis
            pl.BlockSpec((tile_b, D), lambda i: (i, 0)),
            # weights / biases: constant index_map -> VMEM-resident across steps
            pl.BlockSpec((D, Hp), lambda i: (0, 0)),
            pl.BlockSpec((1, Hp), lambda i: (0, 0)),
            pl.BlockSpec((Hp, Op), lambda i: (0, 0)),
            pl.BlockSpec((1, Op), lambda i: (0, 0)),
        ],
        out_specs=pl.BlockSpec((tile_b, Op), lambda i: (i, 0)),
        compiler_params=pltpu.CompilerParams(
            dimension_semantics=("parallel",),   # shards batch across v7x's 2 TCs
            vmem_limit_bytes=vmem_limit),
    )(xp, w1p, b1p, w2p, b2p)

    # Row/feature slice back to the caller's shape; the f32 upcast fuses into
    # this (already required) copy.
    # TODO(synk): if downstream can consume the lane-dense bf16 (Bp, Op) block
    # directly, return `out` and drop this extra HBM pass entirely.
    return out[:B, :out_dim].astype(jnp.float32)


# ----------------------------------------------------------------------------
# DDP wrapper: identical semantics to the PyTorch module.
# ----------------------------------------------------------------------------
class DDP:
    def __init__(self, net):
        self.net = net

    def __call__(self, *args):
        inputs = []
        for arg in args:
            if isinstance(arg, PackedTensor):
                inputs.append(arg.tensor)
            else:
                inputs.append(arg)
        return self.net(*inputs)


class PallasMLPNet:
    """Deterministic small MLP whose forward runs in the Pallas kernel."""

    def __init__(self, key, d_in=32, d_hidden=32, d_out=32):
        k1, k2, k3, k4 = jax.random.split(key, 4)
        scale1 = 1.0 / jnp.sqrt(jnp.float32(d_in))
        scale2 = 1.0 / jnp.sqrt(jnp.float32(d_hidden))
        # weights stored as [in, out] (transposed nn.Linear layout)
        self.w1 = jax.random.normal(k1, (d_in, d_hidden), jnp.float32) * scale1
        self.b1 = jax.random.normal(k2, (1, d_hidden), jnp.float32) * 0.01
        self.w2 = jax.random.normal(k3, (d_hidden, d_out), jnp.float32) * scale2
        self.b2 = jax.random.normal(k4, (1, d_out), jnp.float32) * 0.01
        self.d_out = d_out

        # Pre-pad + pre-cast parameters ONCE (hoisted out of the per-call path).
        Hp = _round_up(d_hidden, 128)
        Op = _round_up(d_out, 128)
        b1 = self.b1 if self.b1.ndim == 2 else self.b1.reshape(1, -1)
        b2 = self.b2 if self.b2.ndim == 2 else self.b2.reshape(1, -1)
        self._w1p = jnp.pad(self.w1, ((0, 0), (0, Hp - d_hidden))).astype(jnp.bfloat16)
        self._b1p = jnp.pad(b1, ((0, 0), (0, Hp - d_hidden)))                 # f32
        self._w2p = jnp.pad(self.w2, ((0, Hp - d_hidden), (0, Op - d_out))
                            ).astype(jnp.bfloat16)
        self._b2p = jnp.pad(b2, ((0, 0), (0, Op - d_out)))                    # f32

    def __call__(self, x):
        return mlp_forward(x, self._w1p, self._b1p, self._w2p, self._b2p,
                           out_dim=self.d_out)


if __name__ == "__main__":
    key = jax.random.PRNGKey(0)
    k_params, k_x = jax.random.split(key)

    B, D = 8, 32
    net = PallasMLPNet(k_params, d_in=D, d_hidden=32, d_out=32)
    model = DDP(net)

    x = jax.random.normal(k_x, (B, D), jnp.float32)
    packed = PackedTensor(x)          # DDP must unwrap this

    out = model(packed)
    out = jax.block_until_ready(out)
    assert out.shape == (B, 32)
    assert out.dtype == jnp.float32

    # bf16-matched reference (same operand + writeback precision as the kernel)
    xb = x.astype(jnp.bfloat16)
    w1b = net.w1.astype(jnp.bfloat16)
    w2b = net.w2.astype(jnp.bfloat16)
    h_ref = jnp.maximum(
        jnp.dot(xb, w1b, preferred_element_type=jnp.float32) + net.b1, 0.0)
    y_ref = jnp.dot(h_ref.astype(jnp.bfloat16), w2b,
                    preferred_element_type=jnp.float32) + net.b2
    ref_bf16 = y_ref.astype(jnp.bfloat16).astype(jnp.float32)
    assert jnp.allclose(out, ref_bf16, atol=2e-2, rtol=2e-2)

    # loose check against the pure-f32 semantics of the original module
    ref_f32 = jnp.maximum(x @ net.w1 + net.b1, 0.0) @ net.w2 + net.b2
    assert jnp.allclose(out, ref_f32, atol=6e-2, rtol=6e-2)

    print("KERNEL_OK")
</pallas_src>

<mosaic_0001>
module attributes {stable_mosaic.version = 11 : i64} {
  func.func @_mlp_kernel(%arg0: i32, %arg1: memref<8x32xbf16, #tpu.memory_space<vmem>>, %arg2: memref<32x128xbf16, #tpu.memory_space<vmem>>, %arg3: memref<1x128xf32, #tpu.memory_space<vmem>>, %arg4: memref<128x128xbf16, #tpu.memory_space<vmem>>, %arg5: memref<1x128xf32, #tpu.memory_space<vmem>>, %arg6: memref<8x128xbf16, #tpu.memory_space<vmem>>) attributes {dimension_semantics = [#tpu.dimension_semantics<parallel>], iteration_bounds = array<i64: 1>, scalar_prefetch = 0 : i64, scratch_operands = 0 : i64, tpu.core_type = #tpu.core_type<tc>, window_params = [{transform_indices = @transform_0, window_bounds = array<i64: 8, 32>}, {pipeline_mode = #tpu.pipeline_mode<synchronous>, transform_indices = @transform_1, window_bounds = array<i64: 32, 128>}, {pipeline_mode = #tpu.pipeline_mode<synchronous>, transform_indices = @transform_2, window_bounds = array<i64: 1, 128>}, {pipeline_mode = #tpu.pipeline_mode<synchronous>, transform_indices = @transform_3, window_bounds = array<i64: 128, 128>}, {pipeline_mode = #tpu.pipeline_mode<synchronous>, transform_indices = @transform_4, window_bounds = array<i64: 1, 128>}, {transform_indices = @transform_5, window_bounds = array<i64: 8, 128>}]} {
    %c0 = arith.constant 0 : index
    %c0_0 = arith.constant 0 : index
    %0 = vector.load %arg1[%c0, %c0_0] : memref<8x32xbf16, #tpu.memory_space<vmem>>, vector<8x32xbf16>
    %c0_1 = arith.constant 0 : index
    %c0_2 = arith.constant 0 : index
    %1 = vector.load %arg2[%c0_1, %c0_2] : memref<32x128xbf16, #tpu.memory_space<vmem>>, vector<32x128xbf16>
    %cst = arith.constant dense<0.000000e+00> : vector<8x128xf32>
    %2 = tpu.matmul %0, %1, %cst {dimension_numbers = #tpu.dot_dimension_numbers<[1], [0], [0], [1], [0, 0, 1, 1], [], []>} : vector<8x32xbf16>, vector<32x128xbf16>, vector<8x128xf32> -> vector<8x128xf32>
    %c0_3 = arith.constant 0 : index
    %c0_4 = arith.constant 0 : index
    %3 = vector.load %arg3[%c0_3, %c0_4] : memref<1x128xf32, #tpu.memory_space<vmem>>, vector<1x128xf32>
    %4 = vector.broadcast %3 : vector<1x128xf32> to vector<8x128xf32>
    %5 = arith.addf %2, %4 : vector<8x128xf32>
    %cst_5 = arith.constant 0.000000e+00 : f32
    %6 = vector.broadcast %cst_5 : f32 to vector<8x128xf32>
    %7 = arith.maximumf %5, %6 : vector<8x128xf32>
    %8 = arith.truncf %7 : vector<8x128xf32> to vector<8x128xbf16>
    %c0_6 = arith.constant 0 : index
    %c0_7 = arith.constant 0 : index
    %9 = vector.load %arg4[%c0_6, %c0_7] : memref<128x128xbf16, #tpu.memory_space<vmem>>, vector<128x128xbf16>
    %cst_8 = arith.constant dense<0.000000e+00> : vector<8x128xf32>
    %10 = tpu.matmul %8, %9, %cst_8 {dimension_numbers = #tpu.dot_dimension_numbers<[1], [0], [0], [1], [0, 0, 1, 1], [], []>} : vector<8x128xbf16>, vector<128x128xbf16>, vector<8x128xf32> -> vector<8x128xf32>
    %c0_9 = arith.constant 0 : index
    %c0_10 = arith.constant 0 : index
    %11 = vector.load %arg5[%c0_9, %c0_10] : memref<1x128xf32, #tpu.memory_space<vmem>>, vector<1x128xf32>
    %12 = vector.broadcast %11 : vector<1x128xf32> to vector<8x128xf32>
    %13 = arith.addf %10, %12 : vector<8x128xf32>
    %14 = arith.truncf %13 : vector<8x128xf32> to vector<8x128xbf16>
    %c0_11 = arith.constant 0 : index
    %c0_12 = arith.constant 0 : index
    %15 = vector.load %arg6[%c0_11, %c0_12] : memref<8x128xbf16, #tpu.memory_space<vmem>>, vector<8x128xbf16>
    tpu.vector_store %arg6[%c0_11, %c0_12], %14 {strides = array<i32>} : memref<8x128xbf16, #tpu.memory_space<vmem>>, vector<8x128xbf16>,
    return
  }
  func.func @transform_0(%arg0: i32) -> (i32, i32) {
    %c0_i32 = arith.constant 0 : i32
    %c0_i32_0 = arith.constant 0 : i32
    return %arg0, %c0_i32 : i32, i32
  }
  func.func @transform_1(%arg0: i32) -> (i32, i32) {
    %c0_i32 = arith.constant 0 : i32
    %c0_i32_0 = arith.constant 0 : i32
    %c0_i32_1 = arith.constant 0 : i32
    return %c0_i32, %c0_i32_0 : i32, i32
  }
  func.func @transform_2(%arg0: i32) -> (i32, i32) {
    %c0_i32 = arith.constant 0 : i32
    %c0_i32_0 = arith.constant 0 : i32
    %c0_i32_1 = arith.constant 0 : i32
    return %c0_i32, %c0_i32_0 : i32, i32
  }
  func.func @transform_3(%arg0: i32) -> (i32, i32) {
    %c0_i32 = arith.constant 0 : i32
    %c0_i32_0 = arith.constant 0 : i32
    %c0_i32_1 = arith.constant 0 : i32
    return %c0_i32, %c0_i32_0 : i32, i32
  }
  func.func @transform_4(%arg0: i32) -> (i32, i32) {
    %c0_i32 = arith.constant 0 : i32
    %c0_i32_0 = arith.constant 0 : i32
    %c0_i32_1 = arith.constant 0 : i32
    return %c0_i32, %c0_i32_0 : i32, i32
  }
  func.func @transform_5(%arg0: i32) -> (i32, i32) {
    %c0_i32 = arith.constant 0 : i32
    %c0_i32_0 = arith.constant 0 : i32
    return %arg0, %c0_i32 : i32, i32
  }
}

</mosaic_0001>

<bundles_post_ra>
// kernel: mlp_forward.1
= control target key start
LH: loop header
LB: loop body
LE: loop exit
PB: predicated region body
PF: predicated region fallthrough
CT: control target
= control target key end

     0   :  { %10 = vsyncpa [#allocation3], 0  ;;  %s427_s0 = inlined_call_operand.vmem [shape: bf16[8,32], index: 0, kind: input, shape index: {}]   ;;  %s428_s1 = inlined_call_operand.hbm [shape: bf16[32,128], index: 1, kind: input, shape index: {}]   ;;  %s429_s2 = inlined_call_operand.vmem [shape: f32[1,128], index: 2, kind: input, shape index: {}]   ;;  %s430_s3 = inlined_call_operand.hbm [shape: bf16[128,128], index: 3, kind: input, shape index: {}]   ;;  %s431_s4 = inlined_call_operand.vmem [shape: f32[1,128], index: 4, kind: input, shape index: {}]   ;;  %s432_s5 = inlined_call_operand.vmem [shape: bf16[8,128], index: 5, kind: output, shape index: {}]  }
   0x1   :  { %11 = vsyncpa [#allocation5], 0  ;;  %s355_s18 = smov [#allocation2]   ;;  %s307_s22 = scalar_lea.hbm %s428_s1, 256 }
   0x2   :  { %s19_s19 = sshll.u32 %s355_s18, 4  ;;  %p308_p0 = scmp.ne.s32.totalorder %s428_s1, %s307_s22  ;;  %s20_s19 = int_to_ptr.vmem [resolvable:$true] %s19_s19 }
   0x3   :  { %p311_p1 = scmp.lt.u32.totalorder %s307_s22, %s428_s1 }
   0x5   :  { %p313_p2 = pnand %p311_p1, %p308_p0 }
   0x7   :  { %316 = shalt.err (!%p313_p2)
}
   0x8   :  { %s317_s27 = scalar_lea.vmem %s20_s19, 256  ;;  %p322_p4 = scmp.lt.s32.totalorder %s20_s19, %s20_s19 }
   0x9   :  { %p318_p3 = scmp.ne.s32.totalorder %s20_s19, %s317_s27  ;;  %p323_p5 = scmp.lt.s32.totalorder %s317_s27, %s317_s27 }
   0xb   :  { %p324_p6 = por %p323_p5, %p322_p4 }
   0xd   :  { %p325_p7 = pnand %p324_p6, %p318_p3 }
   0xf   :  { %328 = shalt.err (!%p325_p7)
}
  0x10   :  { %s356_s28 = smov 64   ;;  %s357_s29 = smov 4  }
  0x11   :  { %25 = dma.hbm_to_vmem [thread:$0]  %s428_s1, 256, %s20_s19, [#allocation3], %s356_s28, %s356_s28, %s357_s29  }
  0x12   :  { %s358_s7 = smov [#allocation4]   ;;  %s329_s11 = scalar_lea.hbm %s430_s3, 1024 }
  0x13   :  { %s33_s8 = sshll.u32 %s358_s7, 4  ;;  %p330_p8 = scmp.ne.s32.totalorder %s430_s3, %s329_s11  ;;  %s34_s8 = int_to_ptr.vmem [resolvable:$true] %s33_s8 }
  0x14   :  { %p333_p9 = scmp.lt.u32.totalorder %s329_s11, %s430_s3 }
  0x16   :  { %p335_p10 = pnand %p333_p9, %p330_p8 }
  0x18   :  { %338 = shalt.err (!%p335_p10)
}
  0x19   :  { %s339_s16 = scalar_lea.vmem %s34_s8, 1024  ;;  %p344_p12 = scmp.lt.s32.totalorder %s34_s8, %s34_s8 }
  0x1a   :  { %p340_p11 = scmp.ne.s32.totalorder %s34_s8, %s339_s16  ;;  %p345_p13 = scmp.lt.s32.totalorder %s339_s16, %s339_s16 }
  0x1c   :  { %p346_p0 = por %p345_p13, %p344_p12 }
  0x1e   :  { %p347_p1 = pnand %p346_p0, %p340_p11 }
  0x20   :  { %350 = shalt.err (!%p347_p1)
}
  0x21   :  { %39 = dma.hbm_to_vmem [thread:$0]  %s430_s3, 1024, %s34_s8, [#allocation5], %s356_s28, %s356_s28, %s357_s29  }
  0x22   :  { %351 = dma.done.wait [#allocation3], 256  }
  0x23   :  { %352 = vsyncadd [#allocation3], 4294967040 }
  0x24   :  { %353 = dma.done.wait [#allocation5], 1024  }
  0x25   :  { %354 = vsyncadd [#allocation5], 4294966272  ;;  %v359_v0 = vmov 0.0   ;;  %vm360_vm0 = vmmov 0   ;;  %v297_v1 = vld [vmem:[#allocation2] sm:$0xff]   ;;  %v298_v2 = vld [vmem:[#allocation2 + $0x8] sm:$0xff]  }
  0x26   :  { %263 = vmatprep.subr.bf16.mxu0 %v359_v0  ;;  %267 = vmatprep.mubr.msk.bf16.mxu0 %vm360_vm0, %v359_v0  ;;  %v299_v3 = vld [vmem:[#allocation4] sm:$0xff]   ;;  %vm73_vm1 = vcmask 261120   ;;  %v300_v4 = vld [vmem:[#allocation4 + $0x8] sm:$0xff]   ;;  %v49_v5 = vld [vmem:[%s427_s0] sm:$0xf] }
  0x27   :  { %271 = vmatprep.subr.bf16.mxu1 %v359_v0  ;;  %287 = vmatprep.mubr.msk.bf16.mxu1 %vm360_vm0, %v359_v0  ;;  %v301_v6 = vld [vmem:[#allocation4 + $0x10] sm:$0xff]   ;;  %v302_v7 = vld [vmem:[#allocation4 + $0x18] sm:$0xff]   ;;  %v303_v8 = vld [vmem:[#allocation4 + $0x20] sm:$0xff]  }
  0x28   :  { %264 = vmatpush3.bf16.msra.mxu0 %v297_v1  ;;  %272 = vmatpush3.bf16.msra.mxu1 %v299_v3  ;;  %v304_v9 = vld [vmem:[#allocation4 + $0x28] sm:$0xff]   ;;  %v305_v10 = vld [vmem:[#allocation4 + $0x30] sm:$0xff]   ;;  %v306_v11 = vld [vmem:[#allocation4 + $0x38] sm:$0xff]  }
  0x29   :  { %265 = vmatprep.subr.bf16.mxu0 %v359_v0  ;;  %273 = vmatprep.subr.bf16.mxu1 %v359_v0  ;;  %v238_v12 = vld [vmem:[%s429_s2] ss:$0 sm:$0xff] }
  0x2a   :  { %v242_v20 = vld [vmem:[%s431_s4] ss:$0 sm:$0xff] }
  0x2c   :  { %266 = vmatpush3.bf16.msra.mxu0 %v298_v2  ;;  %274 = vmatpush3.bf16.msra.mxu1 %v300_v4 }
  0x2d   :  { %275 = vmatprep.subr.bf16.mxu1 %v359_v0 }
  0x2f   :  { %268 = vmatmul.mubr.msk.bf16.vlgmr.msra.gmra.mrb[0].mxu0 %vm73_vm1, %v49_v5 }
  0x30   :  { %276 = vmatpush3.bf16.msra.mxu1 %v301_v6 }
  0x31   :  { %277 = vmatprep.subr.bf16.mxu1 %v359_v0 }
  0x34   :  { %278 = vmatpush3.bf16.msra.mxu1 %v302_v7 }
  0x35   :  { %279 = vmatprep.subr.bf16.mxu1 %v359_v0 }
  0x38   :  { %280 = vmatpush3.bf16.msra.mxu1 %v303_v8 }
  0x39   :  { %281 = vmatprep.subr.bf16.mxu1 %v359_v0 }
  0x3c   :  { %282 = vmatpush3.bf16.msra.mxu1 %v304_v9 }
  0x3d   :  { %283 = vmatprep.subr.bf16.mxu1 %v359_v0 }
  0x40   :  { %284 = vmatpush3.bf16.msra.mxu1 %v305_v10 }
  0x41   :  { %285 = vmatprep.subr.bf16.mxu1 %v359_v0 }
  0x44   :  { %286 = vmatpush3.bf16.msra.mxu1 %v306_v11 }
 0x102   :  { %v111_v13 = vpop.f32.mrb[0].mxu0 }
 0x103   :  { %v112_v14 = vadd.f32 %v238_v12, %v111_v13  ;;  %v269_v15 = vpop.f32.mrb[1].mxu0 }
 0x104   :  { %v114_v16 = vpop.f32.mrb[2].mxu0 }
 0x105   :  { %v117_v17 = vmax.f32 %v112_v14, 0.0  ;;  %v270_v18 = vpop.f32.mrb[3].mxu0 }
 0x107   :  { %v118_v19 = vpack.c.bf16 %v117_v17, %v117_v17 }
 0x109   :  { %288 = vmatmul.mubr.bf16.vlgmr.msra.gmra.mrb[0].mxu1 %v118_v19 }
 0x1dc   :  { %v224_v21 = vpop.f32.mrb[0].mxu1 }
 0x1dd   :  { %v225_v22 = vadd.f32 %v242_v20, %v224_v21  ;;  %v289_v23 = vpop.f32.mrb[1].mxu1 }
 0x1de   :  { %v227_v24 = vpop.f32.mrb[2].mxu1 }
 0x1df   :  { %v230_v25 = vpack.c.bf16 %v225_v22, %v225_v22  ;;  %v290_v26 = vpop.f32.mrb[3].mxu1 }
 0x1e1   :  { %231 = vst [vmem:[%s432_s5] sm:$0xf] %v230_v25 }
 0x1e2   :  { %236 = vsyncpa [#allocation3], 1 }
 0x1e3   :  { %237 = vsyncpa [#allocation5], 1 }

</bundles_post_ra>
